<compile_context>
chip_gen: v7x
topology: tpu7x:2x2x1
jax: 0.10.0
libtpu: 0.0.40
codegen_flags: <defaults>
</compile_context>

<pallas_src>
import functools

import jax
import jax.numpy as jnp
from jax.experimental import pallas as pl
from jax.experimental.pallas import tpu as pltpu


def _round_up(x, m):
    return ((x + m - 1) // m) * m


# ---------------------------------------------------------------------------
# Fused kernel: the entire MLP forward in one kernel body.
# refs layout:
#   [x] + [w_hbm]*L + [b]*L + [out] + [w_vmem_scratch]*L + [dma_sems]
# ---------------------------------------------------------------------------
def _fused_mlp_kernel(*refs, num_layers):
    L = num_layers
    x_ref = refs[0]
    w_hbm = refs[1:1 + L]              # bf16 weights, left in HBM (pl.ANY)
    b_refs = refs[1 + L:1 + 2 * L]     # f32 biases, (1, dout), VMEM
    o_ref = refs[1 + 2 * L]            # f32 output, VMEM
    w_bufs = refs[2 + 2 * L:2 + 3 * L]  # per-layer bf16 VMEM scratch
    sems = refs[2 + 3 * L]             # DMA semaphores, shape (L,)

    # Issue every layer's weight DMA immediately; transfers for later layers
    # overlap the compute of earlier layers.
    copies = []
    for i in range(L):
        cp = pltpu.make_async_copy(w_hbm[i], w_bufs[i], sems.at[i])
        cp.start()
        copies.append(cp)

    h = x_ref[...]  # f32 (Bp, Din0_p)
    for i in range(L):
        copies[i].wait()  # weight i resident in VMEM
        z = jnp.dot(h.astype(jnp.bfloat16), w_bufs[i][...],
                    preferred_element_type=jnp.float32)
        z = z + b_refs[i][...]                      # f32 bias (broadcast rows)
        if i < L - 1:
            h = jnp.where(z >= 0, z, jnp.float32(0.2) * z)   # LeakyReLU(0.2)
        else:
            h = jnp.tanh(z)                                  # final Tanh
    o_ref[...] = h.astype(o_ref.dtype)


# ---------------------------------------------------------------------------
# Parameter init: mirrors nn.Linear default U(-1/sqrt(fan_in), +1/sqrt(fan_in))
# Weights stored as (in, out) (transpose of PyTorch (out, in)), zero-padded to
# 128-lane multiples, cast to bf16 for streaming.  Biases stay f32, (1, dout).
# ---------------------------------------------------------------------------
def init_mlp_g_params(key, dim, output_nc=28 * 28, ndf=512, n_layers=3):
    layer_dims = [(dim, ndf)] + [(ndf, ndf)] * n_layers + [(ndf, output_nc)]
    params = []
    for (din, dout) in layer_dims:
        key, kw, kb = jax.random.split(key, 3)
        bound = 1.0 / float(din) ** 0.5
        w = jax.random.uniform(kw, (din, dout), jnp.float32, -bound, bound)
        b = jax.random.uniform(kb, (dout,), jnp.float32, -bound, bound)
        din_p = _round_up(din, 128)
        dout_p = _round_up(dout, 128)
        w_p = jnp.zeros((din_p, dout_p), jnp.float32).at[:din, :dout].set(w)
        b_p = jnp.zeros((1, dout_p), jnp.float32).at[0, :dout].set(b)
        params.append((w_p.astype(jnp.bfloat16), b_p))
    return params


# ---------------------------------------------------------------------------
# Forward: flatten, pad, one fused pallas_call, slice back to true dims.
# ---------------------------------------------------------------------------
def mlp_g_forward(x, params, output_nc=28 * 28):
    B = x.shape[0]
    h = jnp.reshape(x, (B, -1)).astype(jnp.float32)   # input.view(B, -1)
    din0 = h.shape[1]

    L = len(params)
    ws = [w for (w, _) in params]
    bs = [b for (_, b) in params]
    din0_p = ws[0].shape[0]
    dout_last_p = ws[-1].shape[1]
    assert din0 <= din0_p, (din0, din0_p)

    # Pad batch to a sublane multiple and input features to the padded Din.
    Bp = max(_round_up(B, 8), 8)
    h = jnp.pad(h, ((0, Bp - B), (0, din0_p - din0)))

    # Explicit VMEM budget (safe on v7x's 64 MiB as well as v5e/v6e 128 MiB).
    weight_bytes = sum(int(w.size) * 2 for w in ws)          # bf16 scratch
    bias_bytes = sum(int(b.size) * 4 for b in bs)
    io_bytes = (int(h.size) + Bp * dout_last_p) * 4
    needed = weight_bytes + bias_bytes + io_bytes
    vmem_limit = int(min(max(2 * needed + (2 << 20), 8 << 20), 32 << 20))

    kernel = functools.partial(_fused_mlp_kernel, num_layers=L)
    out_p = pl.pallas_call(
        kernel,
        out_shape=jax.ShapeDtypeStruct((Bp, dout_last_p), jnp.float32),
        in_specs=(
            [pl.BlockSpec(memory_space=pltpu.MemorySpace.VMEM)]        # x
            + [pl.BlockSpec(memory_space=pl.ANY)] * L                  # weights
            + [pl.BlockSpec(memory_space=pltpu.MemorySpace.VMEM)] * L  # biases
        ),
        out_specs=pl.BlockSpec(memory_space=pltpu.MemorySpace.VMEM),
        scratch_shapes=(
            [pltpu.VMEM(w.shape, jnp.bfloat16) for w in ws]
            + [pltpu.SemaphoreType.DMA((L,))]
        ),
        compiler_params=pltpu.CompilerParams(vmem_limit_bytes=vmem_limit),
    )(h, *ws, *bs)

    return out_p[:B, :output_nc]


# Pure-JAX reference using the same (bf16-padded) parameters, for validation.
def _reference_forward(x, params, output_nc=28 * 28):
    B = x.shape[0]
    h = jnp.reshape(x, (B, -1)).astype(jnp.float32)
    din0_p = params[0][0].shape[0]
    h = jnp.pad(h, ((0, 0), (0, din0_p - h.shape[1])))
    L = len(params)
    for i, (w, b) in enumerate(params):
        z = jnp.dot(h.astype(jnp.bfloat16), w,
                    preferred_element_type=jnp.float32) + b
        h = jnp.tanh(z) if i == L - 1 else jnp.where(z >= 0, z, 0.2 * z)
    return h[:, :output_nc]


if __name__ == "__main__":
    # Small shapes: batch=2, NCHW input (2, 4, 8, 8) -> dim = 4*8*8 = 256
    B, C, H, W = 2, 4, 8, 8
    dim = C * H * W
    ndf = 128
    output_nc = 28 * 28   # 784, padded to 896 internally
    n_layers = 3

    key = jax.random.PRNGKey(0)
    kx, kp = jax.random.split(key)
    x = jax.random.normal(kx, (B, C, H, W), jnp.float32)
    params = init_mlp_g_params(kp, dim, output_nc=output_nc, ndf=ndf,
                               n_layers=n_layers)

    fwd = jax.jit(functools.partial(mlp_g_forward, output_nc=output_nc))
    out = jax.block_until_ready(fwd(x, params))

    assert out.shape == (B, output_nc), out.shape
    assert out.dtype == jnp.float32
    assert bool(jnp.all(jnp.isfinite(out)))
    assert bool(jnp.all(jnp.abs(out) <= 1.0))   # tanh output range

    # Tolerance-based check against the pure-JAX forward with the same bf16
    # weights (both accumulate in f32).
    ref = jax.block_until_ready(_reference_forward(x, params, output_nc))
    max_err = float(jnp.max(jnp.abs(out - ref)))
    assert bool(jnp.allclose(out, ref, rtol=2e-2, atol=2e-2)), max_err

    print("KERNEL_OK")
</pallas_src>

<mosaic_0001>
module attributes {stable_mosaic.version = 11 : i64} {
  func.func @_fused_mlp_kernel(%arg0: memref<8x256xf32, #tpu.memory_space<vmem>>, %arg1: memref<256x128xbf16, #tpu.memory_space<any>>, %arg2: memref<128x128xbf16, #tpu.memory_space<any>>, %arg3: memref<128x128xbf16, #tpu.memory_space<any>>, %arg4: memref<128x128xbf16, #tpu.memory_space<any>>, %arg5: memref<128x896xbf16, #tpu.memory_space<any>>, %arg6: memref<1x128xf32, #tpu.memory_space<vmem>>, %arg7: memref<1x128xf32, #tpu.memory_space<vmem>>, %arg8: memref<1x128xf32, #tpu.memory_space<vmem>>, %arg9: memref<1x128xf32, #tpu.memory_space<vmem>>, %arg10: memref<1x896xf32, #tpu.memory_space<vmem>>, %arg11: memref<8x896xf32, #tpu.memory_space<vmem>>, %arg12: memref<256x128xbf16, #tpu.memory_space<vmem>>, %arg13: memref<128x128xbf16, #tpu.memory_space<vmem>>, %arg14: memref<128x128xbf16, #tpu.memory_space<vmem>>, %arg15: memref<128x128xbf16, #tpu.memory_space<vmem>>, %arg16: memref<128x896xbf16, #tpu.memory_space<vmem>>, %arg17: memref<5x!tpu.dma_semaphore, #tpu.memory_space<semaphore_mem>>) attributes {dimension_semantics = [], scalar_prefetch = 0 : i64, scratch_operands = 6 : i64, tpu.core_type = #tpu.core_type<tc>} {
    %c0_i32 = arith.constant 0 : i32
    %0 = tpu.memref_slice %arg17[%c0_i32] : memref<5x!tpu.dma_semaphore, #tpu.memory_space<semaphore_mem>> -> memref<1x!tpu.dma_semaphore, #tpu.memory_space<semaphore_mem>>
    %1 = tpu.memref_squeeze %0 : memref<1x!tpu.dma_semaphore, #tpu.memory_space<semaphore_mem>> -> memref<!tpu.dma_semaphore, #tpu.memory_space<semaphore_mem>>
    tpu.enqueue_dma source(%arg1 : memref<256x128xbf16, #tpu.memory_space<any>>) target(%arg12 : memref<256x128xbf16, #tpu.memory_space<vmem>>) target_semaphore(%1 : memref<!tpu.dma_semaphore, #tpu.memory_space<semaphore_mem>>)
    %c1_i32 = arith.constant 1 : i32
    %2 = tpu.memref_slice %arg17[%c1_i32] : memref<5x!tpu.dma_semaphore, #tpu.memory_space<semaphore_mem>> -> memref<1x!tpu.dma_semaphore, #tpu.memory_space<semaphore_mem>>
    %3 = tpu.memref_squeeze %2 : memref<1x!tpu.dma_semaphore, #tpu.memory_space<semaphore_mem>> -> memref<!tpu.dma_semaphore, #tpu.memory_space<semaphore_mem>>
    tpu.enqueue_dma source(%arg2 : memref<128x128xbf16, #tpu.memory_space<any>>) target(%arg13 : memref<128x128xbf16, #tpu.memory_space<vmem>>) target_semaphore(%3 : memref<!tpu.dma_semaphore, #tpu.memory_space<semaphore_mem>>)
    %c2_i32 = arith.constant 2 : i32
    %4 = tpu.memref_slice %arg17[%c2_i32] : memref<5x!tpu.dma_semaphore, #tpu.memory_space<semaphore_mem>> -> memref<1x!tpu.dma_semaphore, #tpu.memory_space<semaphore_mem>>
    %5 = tpu.memref_squeeze %4 : memref<1x!tpu.dma_semaphore, #tpu.memory_space<semaphore_mem>> -> memref<!tpu.dma_semaphore, #tpu.memory_space<semaphore_mem>>
    tpu.enqueue_dma source(%arg3 : memref<128x128xbf16, #tpu.memory_space<any>>) target(%arg14 : memref<128x128xbf16, #tpu.memory_space<vmem>>) target_semaphore(%5 : memref<!tpu.dma_semaphore, #tpu.memory_space<semaphore_mem>>)
    %c3_i32 = arith.constant 3 : i32
    %6 = tpu.memref_slice %arg17[%c3_i32] : memref<5x!tpu.dma_semaphore, #tpu.memory_space<semaphore_mem>> -> memref<1x!tpu.dma_semaphore, #tpu.memory_space<semaphore_mem>>
    %7 = tpu.memref_squeeze %6 : memref<1x!tpu.dma_semaphore, #tpu.memory_space<semaphore_mem>> -> memref<!tpu.dma_semaphore, #tpu.memory_space<semaphore_mem>>
    tpu.enqueue_dma source(%arg4 : memref<128x128xbf16, #tpu.memory_space<any>>) target(%arg15 : memref<128x128xbf16, #tpu.memory_space<vmem>>) target_semaphore(%7 : memref<!tpu.dma_semaphore, #tpu.memory_space<semaphore_mem>>)
    %c4_i32 = arith.constant 4 : i32
    %8 = tpu.memref_slice %arg17[%c4_i32] : memref<5x!tpu.dma_semaphore, #tpu.memory_space<semaphore_mem>> -> memref<1x!tpu.dma_semaphore, #tpu.memory_space<semaphore_mem>>
    %9 = tpu.memref_squeeze %8 : memref<1x!tpu.dma_semaphore, #tpu.memory_space<semaphore_mem>> -> memref<!tpu.dma_semaphore, #tpu.memory_space<semaphore_mem>>
    tpu.enqueue_dma source(%arg5 : memref<128x896xbf16, #tpu.memory_space<any>>) target(%arg16 : memref<128x896xbf16, #tpu.memory_space<vmem>>) target_semaphore(%9 : memref<!tpu.dma_semaphore, #tpu.memory_space<semaphore_mem>>)
    %c0 = arith.constant 0 : index
    %c0_0 = arith.constant 0 : index
    %10 = vector.load %arg0[%c0, %c0_0] : memref<8x256xf32, #tpu.memory_space<vmem>>, vector<8x256xf32>
    %c0_i32_1 = arith.constant 0 : i32
    %11 = tpu.memref_slice %arg17[%c0_i32_1] : memref<5x!tpu.dma_semaphore, #tpu.memory_space<semaphore_mem>> -> memref<1x!tpu.dma_semaphore, #tpu.memory_space<semaphore_mem>>
    %12 = tpu.memref_squeeze %11 : memref<1x!tpu.dma_semaphore, #tpu.memory_space<semaphore_mem>> -> memref<!tpu.dma_semaphore, #tpu.memory_space<semaphore_mem>>
    tpu.wait_dma2 semaphore(%12 : memref<!tpu.dma_semaphore, #tpu.memory_space<semaphore_mem>>) src(%arg1 : memref<256x128xbf16, #tpu.memory_space<any>>) dst(%arg12 : memref<256x128xbf16, #tpu.memory_space<vmem>>)
    %13 = arith.truncf %10 : vector<8x256xf32> to vector<8x256xbf16>
    %c0_2 = arith.constant 0 : index
    %c0_3 = arith.constant 0 : index
    %14 = vector.load %arg12[%c0_2, %c0_3] : memref<256x128xbf16, #tpu.memory_space<vmem>>, vector<256x128xbf16>
    %cst = arith.constant dense<0.000000e+00> : vector<8x128xf32>
    %15 = tpu.matmul %13, %14, %cst {dimension_numbers = #tpu.dot_dimension_numbers<[1], [0], [0], [1], [0, 0, 1, 1], [], []>} : vector<8x256xbf16>, vector<256x128xbf16>, vector<8x128xf32> -> vector<8x128xf32>
    %c0_4 = arith.constant 0 : index
    %c0_5 = arith.constant 0 : index
    %16 = vector.load %arg6[%c0_4, %c0_5] : memref<1x128xf32, #tpu.memory_space<vmem>>, vector<1x128xf32>
    %17 = vector.broadcast %16 : vector<1x128xf32> to vector<8x128xf32>
    %18 = arith.addf %15, %17 : vector<8x128xf32>
    %cst_6 = arith.constant 0.000000e+00 : f32
    %19 = vector.broadcast %cst_6 : f32 to vector<8x128xf32>
    %20 = arith.cmpf oge, %18, %19 : vector<8x128xf32>
    %cst_7 = arith.constant 2.000000e-01 : f32
    %21 = vector.broadcast %cst_7 : f32 to vector<8x128xf32>
    %22 = arith.mulf %21, %18 : vector<8x128xf32>
    %23 = arith.select %20, %18, %22 : vector<8x128xi1>, vector<8x128xf32>
    %c1_i32_8 = arith.constant 1 : i32
    %24 = tpu.memref_slice %arg17[%c1_i32_8] : memref<5x!tpu.dma_semaphore, #tpu.memory_space<semaphore_mem>> -> memref<1x!tpu.dma_semaphore, #tpu.memory_space<semaphore_mem>>
    %25 = tpu.memref_squeeze %24 : memref<1x!tpu.dma_semaphore, #tpu.memory_space<semaphore_mem>> -> memref<!tpu.dma_semaphore, #tpu.memory_space<semaphore_mem>>
    tpu.wait_dma2 semaphore(%25 : memref<!tpu.dma_semaphore, #tpu.memory_space<semaphore_mem>>) src(%arg2 : memref<128x128xbf16, #tpu.memory_space<any>>) dst(%arg13 : memref<128x128xbf16, #tpu.memory_space<vmem>>)
    %26 = arith.truncf %23 : vector<8x128xf32> to vector<8x128xbf16>
    %c0_9 = arith.constant 0 : index
    %c0_10 = arith.constant 0 : index
    %27 = vector.load %arg13[%c0_9, %c0_10] : memref<128x128xbf16, #tpu.memory_space<vmem>>, vector<128x128xbf16>
    %cst_11 = arith.constant dense<0.000000e+00> : vector<8x128xf32>
    %28 = tpu.matmul %26, %27, %cst_11 {dimension_numbers = #tpu.dot_dimension_numbers<[1], [0], [0], [1], [0, 0, 1, 1], [], []>} : vector<8x128xbf16>, vector<128x128xbf16>, vector<8x128xf32> -> vector<8x128xf32>
    %c0_12 = arith.constant 0 : index
    %c0_13 = arith.constant 0 : index
    %29 = vector.load %arg7[%c0_12, %c0_13] : memref<1x128xf32, #tpu.memory_space<vmem>>, vector<1x128xf32>
    %30 = vector.broadcast %29 : vector<1x128xf32> to vector<8x128xf32>
    %31 = arith.addf %28, %30 : vector<8x128xf32>
    %cst_14 = arith.constant 0.000000e+00 : f32
    %32 = vector.broadcast %cst_14 : f32 to vector<8x128xf32>
    %33 = arith.cmpf oge, %31, %32 : vector<8x128xf32>
    %cst_15 = arith.constant 2.000000e-01 : f32
    %34 = vector.broadcast %cst_15 : f32 to vector<8x128xf32>
    %35 = arith.mulf %34, %31 : vector<8x128xf32>
    %36 = arith.select %33, %31, %35 : vector<8x128xi1>, vector<8x128xf32>
    %c2_i32_16 = arith.constant 2 : i32
    %37 = tpu.memref_slice %arg17[%c2_i32_16] : memref<5x!tpu.dma_semaphore, #tpu.memory_space<semaphore_mem>> -> memref<1x!tpu.dma_semaphore, #tpu.memory_space<semaphore_mem>>
    %38 = tpu.memref_squeeze %37 : memref<1x!tpu.dma_semaphore, #tpu.memory_space<semaphore_mem>> -> memref<!tpu.dma_semaphore, #tpu.memory_space<semaphore_mem>>
    tpu.wait_dma2 semaphore(%38 : memref<!tpu.dma_semaphore, #tpu.memory_space<semaphore_mem>>) src(%arg3 : memref<128x128xbf16, #tpu.memory_space<any>>) dst(%arg14 : memref<128x128xbf16, #tpu.memory_space<vmem>>)
    %39 = arith.truncf %36 : vector<8x128xf32> to vector<8x128xbf16>
    %c0_17 = arith.constant 0 : index
    %c0_18 = arith.constant 0 : index
    %40 = vector.load %arg14[%c0_17, %c0_18] : memref<128x128xbf16, #tpu.memory_space<vmem>>, vector<128x128xbf16>
    %cst_19 = arith.constant dense<0.000000e+00> : vector<8x128xf32>
    %41 = tpu.matmul %39, %40, %cst_19 {dimension_numbers = #tpu.dot_dimension_numbers<[1], [0], [0], [1], [0, 0, 1, 1], [], []>} : vector<8x128xbf16>, vector<128x128xbf16>, vector<8x128xf32> -> vector<8x128xf32>
    %c0_20 = arith.constant 0 : index
    %c0_21 = arith.constant 0 : index
    %42 = vector.load %arg8[%c0_20, %c0_21] : memref<1x128xf32, #tpu.memory_space<vmem>>, vector<1x128xf32>
    %43 = vector.broadcast %42 : vector<1x128xf32> to vector<8x128xf32>
    %44 = arith.addf %41, %43 : vector<8x128xf32>
    %cst_22 = arith.constant 0.000000e+00 : f32
    %45 = vector.broadcast %cst_22 : f32 to vector<8x128xf32>
    %46 = arith.cmpf oge, %44, %45 : vector<8x128xf32>
    %cst_23 = arith.constant 2.000000e-01 : f32
    %47 = vector.broadcast %cst_23 : f32 to vector<8x128xf32>
    %48 = arith.mulf %47, %44 : vector<8x128xf32>
    %49 = arith.select %46, %44, %48 : vector<8x128xi1>, vector<8x128xf32>
    %c3_i32_24 = arith.constant 3 : i32
    %50 = tpu.memref_slice %arg17[%c3_i32_24] : memref<5x!tpu.dma_semaphore, #tpu.memory_space<semaphore_mem>> -> memref<1x!tpu.dma_semaphore, #tpu.memory_space<semaphore_mem>>
    %51 = tpu.memref_squeeze %50 : memref<1x!tpu.dma_semaphore, #tpu.memory_space<semaphore_mem>> -> memref<!tpu.dma_semaphore, #tpu.memory_space<semaphore_mem>>
    tpu.wait_dma2 semaphore(%51 : memref<!tpu.dma_semaphore, #tpu.memory_space<semaphore_mem>>) src(%arg4 : memref<128x128xbf16, #tpu.memory_space<any>>) dst(%arg15 : memref<128x128xbf16, #tpu.memory_space<vmem>>)
    %52 = arith.truncf %49 : vector<8x128xf32> to vector<8x128xbf16>
    %c0_25 = arith.constant 0 : index
    %c0_26 = arith.constant 0 : index
    %53 = vector.load %arg15[%c0_25, %c0_26] : memref<128x128xbf16, #tpu.memory_space<vmem>>, vector<128x128xbf16>
    %cst_27 = arith.constant dense<0.000000e+00> : vector<8x128xf32>
    %54 = tpu.matmul %52, %53, %cst_27 {dimension_numbers = #tpu.dot_dimension_numbers<[1], [0], [0], [1], [0, 0, 1, 1], [], []>} : vector<8x128xbf16>, vector<128x128xbf16>, vector<8x128xf32> -> vector<8x128xf32>
    %c0_28 = arith.constant 0 : index
    %c0_29 = arith.constant 0 : index
    %55 = vector.load %arg9[%c0_28, %c0_29] : memref<1x128xf32, #tpu.memory_space<vmem>>, vector<1x128xf32>
    %56 = vector.broadcast %55 : vector<1x128xf32> to vector<8x128xf32>
    %57 = arith.addf %54, %56 : vector<8x128xf32>
    %cst_30 = arith.constant 0.000000e+00 : f32
    %58 = vector.broadcast %cst_30 : f32 to vector<8x128xf32>
    %59 = arith.cmpf oge, %57, %58 : vector<8x128xf32>
    %cst_31 = arith.constant 2.000000e-01 : f32
    %60 = vector.broadcast %cst_31 : f32 to vector<8x128xf32>
    %61 = arith.mulf %60, %57 : vector<8x128xf32>
    %62 = arith.select %59, %57, %61 : vector<8x128xi1>, vector<8x128xf32>
    %c4_i32_32 = arith.constant 4 : i32
    %63 = tpu.memref_slice %arg17[%c4_i32_32] : memref<5x!tpu.dma_semaphore, #tpu.memory_space<semaphore_mem>> -> memref<1x!tpu.dma_semaphore, #tpu.memory_space<semaphore_mem>>
    %64 = tpu.memref_squeeze %63 : memref<1x!tpu.dma_semaphore, #tpu.memory_space<semaphore_mem>> -> memref<!tpu.dma_semaphore, #tpu.memory_space<semaphore_mem>>
    tpu.wait_dma2 semaphore(%64 : memref<!tpu.dma_semaphore, #tpu.memory_space<semaphore_mem>>) src(%arg5 : memref<128x896xbf16, #tpu.memory_space<any>>) dst(%arg16 : memref<128x896xbf16, #tpu.memory_space<vmem>>)
    %65 = arith.truncf %62 : vector<8x128xf32> to vector<8x128xbf16>
    %c0_33 = arith.constant 0 : index
    %c0_34 = arith.constant 0 : index
    %66 = vector.load %arg16[%c0_33, %c0_34] : memref<128x896xbf16, #tpu.memory_space<vmem>>, vector<128x896xbf16>
    %cst_35 = arith.constant dense<0.000000e+00> : vector<8x896xf32>
    %67 = tpu.matmul %65, %66, %cst_35 {dimension_numbers = #tpu.dot_dimension_numbers<[1], [0], [0], [1], [0, 0, 1, 1], [], []>} : vector<8x128xbf16>, vector<128x896xbf16>, vector<8x896xf32> -> vector<8x896xf32>
    %c0_36 = arith.constant 0 : index
    %c0_37 = arith.constant 0 : index
    %68 = vector.load %arg10[%c0_36, %c0_37] : memref<1x896xf32, #tpu.memory_space<vmem>>, vector<1x896xf32>
    %69 = vector.broadcast %68 : vector<1x896xf32> to vector<8x896xf32>
    %70 = arith.addf %67, %69 : vector<8x896xf32>
    %71 = math.tanh %70 : vector<8x896xf32>
    %c0_38 = arith.constant 0 : index
    %c0_39 = arith.constant 0 : index
    %72 = vector.load %arg11[%c0_38, %c0_39] : memref<8x896xf32, #tpu.memory_space<vmem>>, vector<8x896xf32>
    tpu.vector_store %arg11[%c0_38, %c0_39], %71 {strides = array<i32>} : memref<8x896xf32, #tpu.memory_space<vmem>>, vector<8x896xf32>,
    return
  }
}

</mosaic_0001>

<bundles_post_ra>
// kernel: mlp_g_forward.1
= control target key start
LH: loop header
LB: loop body
LE: loop exit
PB: predicated region body
PF: predicated region fallthrough
CT: control target
= control target key end

     0   :  { %s991_s23 = smov [#allocation2]   ;;  %s1243_s0 = inlined_call_operand.vmem [shape: f32[8,256], index: 0, kind: input, shape index: {}]   ;;  %s1244_s1 = inlined_call_operand.hbm [shape: bf16[256,128], index: 1, kind: input, shape index: {}]   ;;  %s1245_s2 = inlined_call_operand.vmem [shape: bf16[128,128], index: 2, kind: input, shape index: {}]   ;;  %s1246_s3 = inlined_call_operand.hbm [shape: bf16[128,128], index: 3, kind: input, shape index: {}]   ;;  %s1247_s4 = inlined_call_operand.hbm [shape: bf16[128,128], index: 4, kind: input, shape index: {}]   ;;  %s1248_s5 = inlined_call_operand.hbm [shape: bf16[128,896], index: 5, kind: input, shape index: {}]   ;;  %s1249_s6 = inlined_call_operand.vmem [shape: f32[1,128], index: 6, kind: input, shape index: {}]   ;;  %s1250_s7 = inlined_call_operand.vmem [shape: f32[1,128], index: 7, kind: input, shape index: {}]   ;;  %s1251_s8 = inlined_call_operand.vmem [shape: f32[1,128], index: 8, kind: input, shape index: {}]   ;;  %s1252_s9 = inlined_call_operand.vmem [shape: f32[1,128], index: 9, kind: input, shape index: {}]   ;;  %s1253_s10 = inlined_call_operand.vmem [shape: f32[1,896], index: 10, kind: input, shape index: {}]   ;;  %s1254_s11 = inlined_call_operand.vmem [shape: f32[8,896], index: 11, kind: output, shape index: {}]  }
   0x1   :  { %v1070_v0 = vld [vmem:[%s1245_s2] sm:$0xff]  ;;  %v1075_v1 = vld [vmem:[%s1245_s2 + $0x8] sm:$0xff]  ;;  %v1080_v2 = vld [vmem:[%s1245_s2 + $0x10] sm:$0xff]  ;;  %s36_s24 = sshll.u32 %s991_s23, 4  ;;  %s915_s18 = scalar_lea.hbm %s1244_s1, 2048  ;;  %s37_s24 = int_to_ptr.vmem [resolvable:$true] %s36_s24 }
   0x2   :  { %v1085_v3 = vld [vmem:[%s1245_s2 + $0x18] sm:$0xff]  ;;  %v1090_v4 = vld [vmem:[%s1245_s2 + $0x20] sm:$0xff]  ;;  %v1095_v5 = vld [vmem:[%s1245_s2 + $0x28] sm:$0xff]  ;;  %p916_p0 = scmp.ne.s32.totalorder %s1244_s1, %s915_s18  ;;  %p919_p1 = scmp.lt.u32.totalorder %s915_s18, %s1244_s1 }
   0x3   :  { %v1100_v6 = vld [vmem:[%s1245_s2 + $0x30] sm:$0xff]  ;;  %v1105_v7 = vld [vmem:[%s1245_s2 + $0x38] sm:$0xff] }
   0x4   :  { %p921_p2 = pnand %p919_p1, %p916_p0 }
   0x6   :  { %924 = shalt.err (!%p921_p2)  }
   0x7   :  { %s925_s23 = scalar_lea.vmem %s37_s24, 2048  ;;  %p930_p4 = scmp.lt.s32.totalorder %s37_s24, %s37_s24 }
   0x8   :  { %p926_p3 = scmp.ne.s32.totalorder %s37_s24, %s925_s23  ;;  %p931_p5 = scmp.lt.s32.totalorder %s925_s23, %s925_s23 }
   0xa   :  { %p932_p6 = por %p931_p5, %p930_p4 }
   0xc   :  { %p933_p7 = pnand %p932_p6, %p926_p3 }
   0xe   :  { %936 = shalt.err (!%p933_p7)  }
   0xf   :  { %39 = dma.hbm_to_vmem [thread:$0]  %s1244_s1, 2048, %s37_s24, [#allocation7] }
  0x10   :  { %96 = vsyncadd [#allocation7 + $0x1], 1024  ;;  %s992_s26 = smov [#allocation4]   ;;  %s993_s28 = smov [#allocation5]  }
  0x11   :  { %s105_s27 = sshll.u32 %s992_s26, 4  ;;  %s117_s29 = sshll.u32 %s993_s28, 4  ;;  %s106_s27 = int_to_ptr.vmem [resolvable:$true] %s105_s27  ;;  %s118_s29 = int_to_ptr.vmem [resolvable:$true] %s117_s29 }
  0x12   :  { %s937_s13 = scalar_lea.hbm %s1246_s3, 1024 }
  0x13   :  { %p938_p8 = scmp.ne.s32.totalorder %s1246_s3, %s937_s13  ;;  %p941_p9 = scmp.lt.u32.totalorder %s937_s13, %s1246_s3 }
  0x15   :  { %p943_p10 = pnand %p941_p9, %p938_p8 }
  0x17   :  { %946 = shalt.err (!%p943_p10)  }
  0x18   :  { %s947_s1 = scalar_lea.vmem %s106_s27, 1024  ;;  %p952_p12 = scmp.lt.s32.totalorder %s106_s27, %s106_s27 }
  0x19   :  { %p948_p11 = scmp.ne.s32.totalorder %s106_s27, %s947_s1  ;;  %p953_p13 = scmp.lt.s32.totalorder %s947_s1, %s947_s1 }
  0x1b   :  { %p954_p0 = por %p953_p13, %p952_p12 }
  0x1d   :  { %p955_p1 = pnand %p954_p0, %p948_p11 }
  0x1f   :  { %958 = shalt.err (!%p955_p1)  }
  0x20   :  { %108 = dma.hbm_to_vmem [thread:$0]  %s1246_s3, 1024, %s106_s27, [#allocation7 + $0x2] }
  0x21   :  { %s959_s21 = scalar_lea.hbm %s1247_s4, 1024 }
  0x22   :  { %p960_p2 = scmp.ne.s32.totalorder %s1247_s4, %s959_s21  ;;  %p963_p3 = scmp.lt.u32.totalorder %s959_s21, %s1247_s4 }
  0x24   :  { %p965_p4 = pnand %p963_p3, %p960_p2 }
  0x26   :  { %968 = shalt.err (!%p965_p4)  }
  0x27   :  { %s969_s26 = scalar_lea.vmem %s118_s29, 1024  ;;  %p974_p6 = scmp.lt.s32.totalorder %s118_s29, %s118_s29 }
  0x28   :  { %p970_p5 = scmp.ne.s32.totalorder %s118_s29, %s969_s26  ;;  %p975_p7 = scmp.lt.s32.totalorder %s969_s26, %s969_s26 }
  0x2a   :  { %p976_p8 = por %p975_p7, %p974_p6 }
  0x2c   :  { %p977_p9 = pnand %p976_p8, %p970_p5 }
  0x2e   :  { %980 = shalt.err (!%p977_p9)  }
  0x2f   :  { %120 = dma.hbm_to_vmem [thread:$0]  %s1247_s4, 1024, %s118_s29, [#allocation7 + $0x3] }
  0x30   :  { %s126_s28 = sld [smem:[#allocation0]]   ;;  %s994_s30 = smov [#allocation6]  }
  0x31   :  { %s134_s12 = sshll.u32 %s994_s30, 4  ;;  %s995_s13 = smov 896   ;;  %s135_s12 = int_to_ptr.vmem [resolvable:$true] %s134_s12 }
  0x32   :  { %138 = sst [smem:[#allocation18]] %s995_s13  ;;  %s996_s14 = smov 7  }
  0x33   :  { %140 = sst [smem:[#allocation18 + $0x1]] %s995_s13  ;;  %s997_s15 = smov 64  }
  0x34   :  { %142 = sst [smem:[#allocation18 + $0x2]] %s996_s14  ;;  %s998_s17 = smov 128  }
  0x35   :  { %144 = sst [smem:[#allocation18 + $0x3]] %s997_s15  ;;  %s999_s24 = smov 2  }
  0x36   :  { %s736_s16 = sshll.u32 %s126_s28, 26  ;;  %146 = sst [smem:[#allocation18 + $0x4]] %s998_s17 }
  0x37   :  { %s737_s1 = sadd.s32 134217728, %s736_s16  ;;  %148 = sst [smem:[#allocation18 + $0x5]] %s999_s24 }
  0x38   :  { %s1000_s18 = smov 448   ;;  %152 = sst [smem:[#allocation18 + $0x7]] %s997_s15 }
  0x39   :  { %150 = sst [smem:[#allocation18 + $0x6]] %s1000_s18  ;;  %s1001_s4 = smov 4  }
  0x3a   :  { %154 = sst [smem:[#allocation18 + $0x8]] %s1001_s4  ;;  %s1002_s29 = smov [#allocation7 + $0x4]  }
  0x3b   :  { %s1003_s19 = smov [#allocation17]  }
  0x3c   :  { %156 = dma.general %s1248_s5, 7168, %s135_s12, %s1002_s29, %s1003_s19, [#allocation18], %s737_s1, 0  }
  0x3d   :  { %v157_v8 = vld [vmem:[%s1243_s0] sm:$0xff]  ;;  %v158_v9 = vld [vmem:[%s1243_s0 + $0x8] sm:$0xff] }
  0x3e   :  { %981 = dma.done.wait [#allocation7], 2048 }
  0x3f   :  { %982 = vsyncadd [#allocation7], 4294965248  ;;  %v164_v10 = vpack.c.bf16 %v158_v9, %v158_v9  ;;  %v173_v11 = vld [vmem:[#allocation2 + $0x40] sm:$0xff]  ;;  %v174_v13 = vld [vmem:[#allocation2 + $0x48] sm:$0xff]  ;;  %v163_v27 = vpack.c.bf16 %v157_v8, %v157_v8 }
  0x40   :  { %v165_v12 = vld [vmem:[#allocation2] sm:$0xff]  ;;  %747 = vmatprep.subr.bf16.mxu0 %v173_v11  ;;  %v166_v14 = vld [vmem:[#allocation2 + $0x8] sm:$0xff]  ;;  %v175_v15 = vld [vmem:[#allocation2 + $0x50] sm:$0xff] }
  0x41   :  { %220 = vmatprep.mubr.bf16.mxu0 %v164_v10  ;;  %748 = vmatpush3.bf16.msra.mxu0 %v165_v12  ;;  %v167_v16 = vld [vmem:[#allocation2 + $0x10] sm:$0xff]  ;;  %v176_v17 = vld [vmem:[#allocation2 + $0x58] sm:$0xff]  ;;  %v177_v19 = vld [vmem:[#allocation2 + $0x60] sm:$0xff] }
  0x42   :  { %749 = vmatprep.subr.bf16.mxu0 %v174_v13  ;;  %v168_v18 = vld [vmem:[#allocation2 + $0x18] sm:$0xff]  ;;  %v169_v20 = vld [vmem:[#allocation2 + $0x20] sm:$0xff]  ;;  %v178_v21 = vld [vmem:[#allocation2 + $0x68] sm:$0xff] }
  0x43   :  { %v170_v22 = vld [vmem:[#allocation2 + $0x28] sm:$0xff]  ;;  %v179_v23 = vld [vmem:[#allocation2 + $0x70] sm:$0xff]  ;;  %v180_v25 = vld [vmem:[#allocation2 + $0x78] sm:$0xff] }
  0x44   :  { %v171_v24 = vld [vmem:[#allocation2 + $0x30] sm:$0xff]  ;;  %v172_v26 = vld [vmem:[#allocation2 + $0x38] sm:$0xff]  ;;  %v738_v29 = vld [vmem:[%s1249_s6] ss:$0 sm:$0xff] }
  0x45   :  { %750 = vmatpush3.bf16.msra.mxu0 %v166_v14 }
  0x46   :  { %751 = vmatprep.subr.bf16.mxu0 %v175_v15 }
  0x49   :  { %752 = vmatpush3.bf16.msra.mxu0 %v167_v16 }
  0x4a   :  { %753 = vmatprep.subr.bf16.mxu0 %v176_v17 }
  0x4d   :  { %754 = vmatpush3.bf16.msra.mxu0 %v168_v18 }
  0x4e   :  { %755 = vmatprep.subr.bf16.mxu0 %v177_v19 }
  0x51   :  { %756 = vmatpush3.bf16.msra.mxu0 %v169_v20 }
  0x52   :  { %757 = vmatprep.subr.bf16.mxu0 %v178_v21 }
  0x55   :  { %758 = vmatpush3.bf16.msra.mxu0 %v170_v22 }
  0x56   :  { %759 = vmatprep.subr.bf16.mxu0 %v179_v23 }
  0x59   :  { %760 = vmatpush3.bf16.msra.mxu0 %v171_v24 }
  0x5a   :  { %761 = vmatprep.subr.bf16.mxu0 %v180_v25 }
  0x5d   :  { %762 = vmatpush3.bf16.msra.mxu0 %v172_v26 }
  0x60   :  { %221 = vmatmul.mubr.bf16.vlgmr.msra.gmra.mrb[0].mxu0 %v163_v27 }
 0x133   :  { %v763_v28 = vpop.f32.mrb[0].mxu0 }
 0x134   :  { %v764_v30 = vpop.f32.mrb[1].mxu0 }
 0x135   :  { %v765_v31 = vadd.f32 %v764_v30, %v763_v28  ;;  %v766_v32 = vpop.f32.mrb[2].mxu0 }
 0x136   :  { %v767_v33 = vpop.f32.mrb[3].mxu0 }
 0x137   :  { %v223_v34 = vadd.f32 %v765_v31, %v738_v29 }
 0x139   :  { %vm228_vm0 = vcmp.ge.f32.partialorder %v223_v34, 0.0  ;;  %v229_v35 = vmul.f32 0.2, %v223_v34 }
 0x13b   :  { %v230_v36 = vsel %vm228_vm0, %v223_v34, %v229_v35 }
 0x13c   :  { %983 = dma.done.wait [#allocation7 + $0x1], 1024 }
 0x13d   :  { %984 = vsyncadd [#allocation7 + $0x1], 4294966272  ;;  %v1004_v37 = vmov 0.0   ;;  %vm1005_vm1 = vmmov 0   ;;  %v235_v38 = vpack.c.bf16 %v230_v36, %v230_v36  ;;  %v739_v39 = vld [vmem:[%s1250_s7] ss:$0 sm:$0xff] }
 0x13e   :  { %805 = vmatprep.subr.bf16.mxu1 %v1004_v37  ;;  %821 = vmatprep.mubr.msk.bf16.mxu1 %vm1005_vm1, %v1004_v37 }
 0x13f   :  { %806 = vmatpush3.bf16.msra.mxu1 %v1070_v0 }
 0x140   :  { %807 = vmatprep.subr.bf16.mxu1 %v1004_v37 }
 0x143   :  { %808 = vmatpush3.bf16.msra.mxu1 %v1075_v1 }
 0x144   :  { %809 = vmatprep.subr.bf16.mxu1 %v1004_v37 }
 0x147   :  { %810 = vmatpush3.bf16.msra.mxu1 %v1080_v2 }
 0x148   :  { %811 = vmatprep.subr.bf16.mxu1 %v1004_v37 }
 0x14b   :  { %812 = vmatpush3.bf16.msra.mxu1 %v1085_v3 }
 0x14c   :  { %813 = vmatprep.subr.bf16.mxu1 %v1004_v37 }
 0x14f   :  { %814 = vmatpush3.bf16.msra.mxu1 %v1090_v4 }
 0x150   :  { %815 = vmatprep.subr.bf16.mxu1 %v1004_v37 }
 0x153   :  { %816 = vmatpush3.bf16.msra.mxu1 %v1095_v5 }
 0x154   :  { %817 = vmatprep.subr.bf16.mxu1 %v1004_v37 }
 0x157   :  { %818 = vmatpush3.bf16.msra.mxu1 %v1100_v6 }
 0x158   :  { %819 = vmatprep.subr.bf16.mxu1 %v1004_v37 }
 0x15b   :  { %820 = vmatpush3.bf16.msra.mxu1 %v1105_v7 }
 0x15e   :  { %822 = vmatmul.mubr.bf16.vlgmr.msra.gmra.mrb[0].mxu1 %v235_v38 }
 0x231   :  { %v285_v40 = vpop.f32.mrb[0].mxu1 }
 0x232   :  { %v286_v41 = vadd.f32 %v739_v39, %v285_v40  ;;  %v823_v42 = vpop.f32.mrb[1].mxu1 }
 0x233   :  { %v288_v43 = vpop.f32.mrb[2].mxu1 }
 0x234   :  { %vm291_vm2 = vcmp.ge.f32.partialorder %v286_v41, 0.0  ;;  %v292_v44 = vmul.f32 0.2, %v286_v41  ;;  %v824_v45 = vpop.f32.mrb[3].mxu1 }
 0x236   :  { %v293_v46 = vsel %vm291_vm2, %v286_v41, %v292_v44 }
 0x237   :  { %985 = dma.done.wait [#allocation7 + $0x2], 1024 }
 0x238   :  { %986 = vsyncadd [#allocation7 + $0x2], 4294966272  ;;  %825 = vmatprep.subr.bf16.mxu0 %v1004_v37  ;;  %841 = vmatprep.mubr.msk.bf16.mxu0 %vm1005_vm1, %v1004_v37  ;;  %v297_v47 = vld [vmem:[#allocation4] sm:$0xff]  ;;  %v298_v48 = vld [vmem:[#allocation4 + $0x8] sm:$0xff]  ;;  %v296_v55 = vpack.c.bf16 %v293_v46, %v293_v46 }
 0x239   :  { %826 = vmatpush3.bf16.msra.mxu0 %v297_v47  ;;  %v299_v49 = vld [vmem:[#allocation4 + $0x10] sm:$0xff]  ;;  %v300_v50 = vld [vmem:[#allocation4 + $0x18] sm:$0xff]  ;;  %v301_v51 = vld [vmem:[#allocation4 + $0x20] sm:$0xff] }
 0x23a   :  { %827 = vmatprep.subr.bf16.mxu0 %v1004_v37  ;;  %v302_v52 = vld [vmem:[#allocation4 + $0x28] sm:$0xff]  ;;  %v303_v53 = vld [vmem:[#allocation4 + $0x30] sm:$0xff]  ;;  %v304_v54 = vld [vmem:[#allocation4 + $0x38] sm:$0xff] }
 0x23b   :  { %v740_v56 = vld [vmem:[%s1251_s8] ss:$0 sm:$0xff] }
 0x23d   :  { %828 = vmatpush3.bf16.msra.mxu0 %v298_v48 }
 0x23e   :  { %829 = vmatprep.subr.bf16.mxu0 %v1004_v37 }
 0x241   :  { %830 = vmatpush3.bf16.msra.mxu0 %v299_v49 }
 0x242   :  { %831 = vmatprep.subr.bf16.mxu0 %v1004_v37 }
 0x245   :  { %832 = vmatpush3.bf16.msra.mxu0 %v300_v50 }
 0x246   :  { %833 = vmatprep.subr.bf16.mxu0 %v1004_v37 }
 0x249   :  { %834 = vmatpush3.bf16.msra.mxu0 %v301_v51 }
 0x24a   :  { %835 = vmatprep.subr.bf16.mxu0 %v1004_v37 }
 0x24d   :  { %836 = vmatpush3.bf16.msra.mxu0 %v302_v52 }
 0x24e   :  { %837 = vmatprep.subr.bf16.mxu0 %v1004_v37 }
 0x251   :  { %838 = vmatpush3.bf16.msra.mxu0 %v303_v53 }
 0x252   :  { %839 = vmatprep.subr.bf16.mxu0 %v1004_v37 }
 0x255   :  { %840 = vmatpush3.bf16.msra.mxu0 %v304_v54 }
 0x258   :  { %842 = vmatmul.mubr.bf16.vlgmr.msra.gmra.mrb[4].mxu0 %v296_v55 }
 0x32b   :  { %v346_v57 = vpop.f32.mrb[4].mxu0 }
 0x32c   :  { %v347_v58 = vadd.f32 %v740_v56, %v346_v57  ;;  %v843_v59 = vpop.f32.mrb[5].mxu0 }
 0x32d   :  { %v349_v60 = vpop.f32.mrb[6].mxu0 }
 0x32e   :  { %vm352_vm3 = vcmp.ge.f32.partialorder %v347_v58, 0.0  ;;  %v353_v61 = vmul.f32 0.2, %v347_v58  ;;  %v844_v62 = vpop.f32.mrb[7].mxu0 }
 0x330   :  { %v354_v63 = vsel %vm352_vm3, %v347_v58, %v353_v61 }
 0x331   :  { %987 = dma.done.wait [#allocation7 + $0x3], 1024 }
 0x332   :  { %988 = vsyncadd [#allocation7 + $0x3], 4294966272  ;;  %845 = vmatprep.subr.bf16.mxu1 %v1004_v37  ;;  %861 = vmatprep.mubr.msk.bf16.mxu1 %vm1005_vm1, %v1004_v37  ;;  %v358_v0 = vld [vmem:[#allocation5] sm:$0xff]  ;;  %v359_v1 = vld [vmem:[#allocation5 + $0x8] sm:$0xff]  ;;  %v357_v8 = vpack.c.bf16 %v354_v63, %v354_v63 }
 0x333   :  { %846 = vmatpush3.bf16.msra.mxu1 %v358_v0  ;;  %v360_v2 = vld [vmem:[#allocation5 + $0x10] sm:$0xff]  ;;  %v361_v3 = vld [vmem:[#allocation5 + $0x18] sm:$0xff]  ;;  %v362_v4 = vld [vmem:[#allocation5 + $0x20] sm:$0xff] }
 0x334   :  { %847 = vmatprep.subr.bf16.mxu1 %v1004_v37  ;;  %v363_v5 = vld [vmem:[#allocation5 + $0x28] sm:$0xff]  ;;  %v364_v6 = vld [vmem:[#allocation5 + $0x30] sm:$0xff]  ;;  %v365_v7 = vld [vmem:[#allocation5 + $0x38] sm:$0xff] }
 0x335   :  { %v741_v9 = vld [vmem:[%s1252_s9] ss:$0 sm:$0xff] }
 0x337   :  { %848 = vmatpush3.bf16.msra.mxu1 %v359_v1 }
 0x338   :  { %849 = vmatprep.subr.bf16.mxu1 %v1004_v37 }
 0x33b   :  { %850 = vmatpush3.bf16.msra.mxu1 %v360_v2 }
 0x33c   :  { %851 = vmatprep.subr.bf16.mxu1 %v1004_v37 }
 0x33f   :  { %852 = vmatpush3.bf16.msra.mxu1 %v361_v3 }
 0x340   :  { %853 = vmatprep.subr.bf16.mxu1 %v1004_v37 }
 0x343   :  { %854 = vmatpush3.bf16.msra.mxu1 %v362_v4 }
 0x344   :  { %855 = vmatprep.subr.bf16.mxu1 %v1004_v37 }
 0x347   :  { %856 = vmatpush3.bf16.msra.mxu1 %v363_v5 }
 0x348   :  { %857 = vmatprep.subr.bf16.mxu1 %v1004_v37 }
 0x34b   :  { %858 = vmatpush3.bf16.msra.mxu1 %v364_v6 }
 0x34c   :  { %859 = vmatprep.subr.bf16.mxu1 %v1004_v37 }
 0x34f   :  { %860 = vmatpush3.bf16.msra.mxu1 %v365_v7 }
 0x352   :  { %862 = vmatmul.mubr.bf16.vlgmr.msra.gmra.mrb[4].mxu1 %v357_v8 }
 0x425   :  { %v407_v10 = vpop.f32.mrb[4].mxu1 }
 0x426   :  { %v408_v11 = vadd.f32 %v741_v9, %v407_v10  ;;  %v863_v12 = vpop.f32.mrb[5].mxu1 }
 0x427   :  { %v410_v13 = vpop.f32.mrb[6].mxu1 }
 0x428   :  { %vm413_vm4 = vcmp.ge.f32.partialorder %v408_v11, 0.0  ;;  %v414_v14 = vmul.f32 0.2, %v408_v11  ;;  %v864_v15 = vpop.f32.mrb[7].mxu1 }
 0x42a   :  { %v1202_v16 = vsel %vm413_vm4, %v408_v11, %v414_v14 }
 0x42b   :  { %989 = dma.done.wait [#allocation7 + $0x4], 7168 }
 0x42c   :  { %990 = vsyncadd [#allocation7 + $0x4], 4294960128  ;;  %v1006_v17 = vmov 0   ;;  %v421_v18 = vld [vmem:[#allocation6 + $0x8] sm:$0xff]  ;;  %v423_v19 = vld [vmem:[#allocation6 + $0x18] sm:$0xff]  ;;  %v419_v52 = vpack.c.bf16 %v1202_v16, %v1202_v16  ;;  %v478_v12 = vlaneseq }
 0x42d   :  { %545 = vmatprep.mubr.bf16.mxu0 %v1006_v17  ;;  %586 = vmatprep.mubr.bf16.mxu1 %v1006_v17  ;;  %v420_v20 = vld [vmem:[#allocation6] sm:$0xff]  ;;  %v422_v21 = vld [vmem:[#allocation6 + $0x10] sm:$0xff]  ;;  %v427_v24 = vld [vmem:[#allocation6 + $0x38] sm:$0xff] }
 0x42e   :  { %513 = vmatprep.subr.bf16.mxu0 %v421_v18  ;;  %554 = vmatprep.subr.bf16.mxu1 %v423_v19  ;;  %v428_v22 = vld [vmem:[#allocation6 + $0x40] sm:$0xff]  ;;  %v430_v23 = vld [vmem:[#allocation6 + $0x50] sm:$0xff]  ;;  %v429_v25 = vld [vmem:[#allocation6 + $0x48] sm:$0xff]  ;;  %v479_v13 = vshrl.u32 %v478_v12, 7 }
 0x42f   :  { %514 = vmatpush1.bf16.msra.mxu0 %v420_v20  ;;  %555 = vmatpush1.bf16.msra.mxu1 %v422_v21  ;;  %v435_v26 = vld [vmem:[#allocation6 + $0x78] sm:$0xff]  ;;  %v437_v27 = vld [vmem:[#allocation6 + $0x88] sm:$0xff]  ;;  %v434_v28 = vld [vmem:[#allocation6 + $0x70] sm:$0xff] }
 0x430   :  { %515 = vmatprep.subr.bf16.mxu0 %v428_v22  ;;  %556 = vmatprep.subr.bf16.mxu1 %v430_v23  ;;  %v436_v29 = vld [vmem:[#allocation6 + $0x80] sm:$0xff]  ;;  %v442_v30 = vld [vmem:[#allocation6 + $0xb0] sm:$0xff]  ;;  %v441_v32 = vld [vmem:[#allocation6 + $0xa8] sm:$0xff]  ;;  %v480_v14 = vsub.s32 0, %v479_v13  ;;  %v488_v15 = vsub.s32 2, %v479_v13  ;;  %v492_v18 = vsub.s32 3, %v479_v13 }
 0x431   :  { %v444_v31 = vld [vmem:[#allocation6 + $0xc0] sm:$0xff]  ;;  %v443_v33 = vld [vmem:[#allocation6 + $0xb8] sm:$0xff]  ;;  %v449_v34 = vld [vmem:[#allocation6 + $0xe8] sm:$0xff] }
 0x432   :  { %v451_v35 = vld [vmem:[#allocation6 + $0xf8] sm:$0xff]  ;;  %v448_v36 = vld [vmem:[#allocation6 + $0xe0] sm:$0xff]  ;;  %v450_v38 = vld [vmem:[#allocation6 + $0xf0] sm:$0xff] }
 0x433   :  { %516 = vmatpush1.bf16.msra.mxu0 %v427_v24  ;;  %557 = vmatpush1.bf16.msra.mxu1 %v429_v25  ;;  %v456_v39 = vld [vmem:[#allocation6 + $0x120] sm:$0xff]  ;;  %v458_v40 = vld [vmem:[#allocation6 + $0x130] sm:$0xff]  ;;  %v455_v41 = vld [vmem:[#allocation6 + $0x118] sm:$0xff] }
 0x434   :  { %517 = vmatprep.subr.bf16.mxu0 %v435_v26  ;;  %558 = vmatprep.subr.bf16.mxu1 %v437_v27  ;;  %v457_v42 = vld [vmem:[#allocation6 + $0x128] sm:$0xff]  ;;  %v463_v43 = vld [vmem:[#allocation6 + $0x158] sm:$0xff]  ;;  %v462_v45 = vld [vmem:[#allocation6 + $0x150] sm:$0xff] }
 0x435   :  { %v465_v44 = vld [vmem:[#allocation6 + $0x168] sm:$0xff]  ;;  %v464_v46 = vld [vmem:[#allocation6 + $0x160] sm:$0xff]  ;;  %v470_v47 = vld [vmem:[#allocation6 + $0x190] sm:$0xff] }
 0x436   :  { %v472_v48 = vld [vmem:[#allocation6 + $0x1a0] sm:$0xff]  ;;  %v469_v49 = vld [vmem:[#allocation6 + $0x188] sm:$0xff]  ;;  %v471_v50 = vld [vmem:[#allocation6 + $0x198] sm:$0xff] }
 0x437   :  { %518 = vmatpush1.bf16.msra.mxu0 %v434_v28  ;;  %559 = vmatpush1.bf16.msra.mxu1 %v436_v29  ;;  %v425_v51 = vld [vmem:[#allocation6 + $0x28] sm:$0xff]  ;;  %v424_v53 = vld [vmem:[#allocation6 + $0x20] sm:$0xff]  ;;  %v426_v54 = vld [vmem:[#allocation6 + $0x30] sm:$0xff] }
 0x438   :  { %519 = vmatprep.subr.bf16.mxu0 %v442_v30  ;;  %560 = vmatprep.subr.bf16.mxu1 %v444_v31  ;;  %v432_v55 = vld [vmem:[#allocation6 + $0x60] sm:$0xff]  ;;  %v431_v56 = vld [vmem:[#allocation6 + $0x58] sm:$0xff]  ;;  %v433_v57 = vld [vmem:[#allocation6 + $0x68] sm:$0xff] }
 0x439   :  { %v439_v58 = vld [vmem:[#allocation6 + $0x98] sm:$0xff]  ;;  %v438_v59 = vld [vmem:[#allocation6 + $0x90] sm:$0xff]  ;;  %v440_v60 = vld [vmem:[#allocation6 + $0xa0] sm:$0xff] }
 0x43a   :  { %v446_v61 = vld [vmem:[#allocation6 + $0xd0] sm:$0xff]  ;;  %v445_v62 = vld [vmem:[#allocation6 + $0xc8] sm:$0xff]  ;;  %v447_v63 = vld [vmem:[#allocation6 + $0xd8] sm:$0xff] }
 0x43b   :  { %520 = vmatpush1.bf16.msra.mxu0 %v441_v32  ;;  %561 = vmatpush1.bf16.msra.mxu1 %v443_v33  ;;  %v453_v0 = vld [vmem:[#allocation6 + $0x108] sm:$0xff]  ;;  %v452_v1 = vld [vmem:[#allocation6 + $0x100] sm:$0xff]  ;;  %v454_v2 = vld [vmem:[#allocation6 + $0x110] sm:$0xff] }
 0x43c   :  { %521 = vmatprep.subr.bf16.mxu0 %v449_v34  ;;  %562 = vmatprep.subr.bf16.mxu1 %v451_v35  ;;  %v460_v3 = vld [vmem:[#allocation6 + $0x140] sm:$0xff]  ;;  %v459_v4 = vld [vmem:[#allocation6 + $0x138] sm:$0xff]  ;;  %v461_v5 = vld [vmem:[#allocation6 + $0x148] sm:$0xff] }
 0x43d   :  { %v467_v6 = vld [vmem:[#allocation6 + $0x178] sm:$0xff]  ;;  %v466_v7 = vld [vmem:[#allocation6 + $0x170] sm:$0xff]  ;;  %v468_v8 = vld [vmem:[#allocation6 + $0x180] sm:$0xff] }
 0x43e   :  { %v474_v9 = vld [vmem:[#allocation6 + $0x1b0] sm:$0xff]  ;;  %v473_v10 = vld [vmem:[#allocation6 + $0x1a8] sm:$0xff]  ;;  %v475_v11 = vld [vmem:[#allocation6 + $0x1b8] sm:$0xff] }
 0x43f   :  { %522 = vmatpush1.bf16.msra.mxu0 %v448_v36  ;;  %563 = vmatpush1.bf16.msra.mxu1 %v450_v38  ;;  %v476_v16 = vld [vmem:[%s1253_s10] sm:$0xff] }
 0x440   :  { %523 = vmatprep.subr.bf16.mxu0 %v456_v39  ;;  %564 = vmatprep.subr.bf16.mxu1 %v458_v40  ;;  %v481_v19 = vrot.slane %v476_v16, %v480_v14  ;;  %v489_v20 = vrot.slane %v476_v16, %v488_v15  ;;  %v496_v39 = vsub.s32 4, %v479_v13  ;;  %v504_v40 = vsub.s32 6, %v479_v13 }
 0x443   :  { %524 = vmatpush1.bf16.msra.mxu0 %v455_v41  ;;  %565 = vmatpush1.bf16.msra.mxu1 %v457_v42  ;;  %v500_v41 = vsub.s32 5, %v479_v13  ;;  %v497_v42 = vrot.slane %v476_v16, %v496_v39 }
 0x444   :  { %525 = vmatprep.subr.bf16.mxu0 %v463_v43  ;;  %566 = vmatprep.subr.bf16.mxu1 %v465_v44  ;;  %v505_v43 = vrot.slane %v476_v16, %v504_v40 }
 0x445   :  { %v501_v44 = vrot.slane %v476_v16, %v500_v41 }
 0x447   :  { %526 = vmatpush1.bf16.msra.mxu0 %v462_v45  ;;  %567 = vmatpush1.bf16.msra.mxu1 %v464_v46 }
 0x448   :  { %527 = vmatprep.subr.bf16.mxu0 %v470_v47  ;;  %568 = vmatprep.subr.bf16.mxu1 %v472_v48 }
 0x44b   :  { %528 = vmatpush1.bf16.msra.mxu0 %v469_v49  ;;  %569 = vmatpush1.bf16.msra.mxu1 %v471_v50 }
 0x44c   :  { %595 = vmatprep.subr.bf16.mxu0 %v425_v51  ;;  %865 = vmatprep.subr.bf16.mxu1 %v1004_v37 }
 0x44e   :  { %546 = vmatmul.mubr.bf16.vlgmr.msra.gmra.mrb[8].mxu0 %v419_v52  ;;  %587 = vmatmul.mubr.bf16.vlgmr.msra.gmra.mrb[8].mxu1 %v419_v52 }
 0x44f   :  { %596 = vmatpush1.bf16.msra.mxu0 %v424_v53  ;;  %866 = vmatpush3.bf16.msra.mxu1 %v426_v54 }
 0x450   :  { %597 = vmatprep.subr.bf16.mxu0 %v432_v55  ;;  %867 = vmatprep.subr.bf16.mxu1 %v1004_v37 }
 0x451   :  { %627 = vmatprep.mubr.bf16.mxu0 %v1006_v17  ;;  %881 = vmatprep.mubr.msk.bf16.mxu1 %vm1005_vm1, %v1004_v37  ;;  %v484_v17 = vsub.s32 1, %v479_v13 }
 0x453   :  { %598 = vmatpush1.bf16.msra.mxu0 %v431_v56  ;;  %868 = vmatpush3.bf16.msra.mxu1 %v433_v57  ;;  %v485_v21 = vrot.slane %v476_v16, %v484_v17 }
 0x454   :  { %599 = vmatprep.subr.bf16.mxu0 %v439_v58  ;;  %869 = vmatprep.subr.bf16.mxu1 %v1004_v37 }
 0x457   :  { %600 = vmatpush1.bf16.msra.mxu0 %v438_v59  ;;  %870 = vmatpush3.bf16.msra.mxu1 %v440_v60 }
 0x458   :  { %601 = vmatprep.subr.bf16.mxu0 %v446_v61  ;;  %871 = vmatprep.subr.bf16.mxu1 %v1004_v37 }
 0x45b   :  { %602 = vmatpush1.bf16.msra.mxu0 %v445_v62  ;;  %872 = vmatpush3.bf16.msra.mxu1 %v447_v63 }
 0x45c   :  { %603 = vmatprep.subr.bf16.mxu0 %v453_v0  ;;  %873 = vmatprep.subr.bf16.mxu1 %v1004_v37 }
 0x45f   :  { %604 = vmatpush1.bf16.msra.mxu0 %v452_v1  ;;  %874 = vmatpush3.bf16.msra.mxu1 %v454_v2 }
 0x460   :  { %605 = vmatprep.subr.bf16.mxu0 %v460_v3  ;;  %875 = vmatprep.subr.bf16.mxu1 %v1004_v37 }
 0x463   :  { %606 = vmatpush1.bf16.msra.mxu0 %v459_v4  ;;  %876 = vmatpush3.bf16.msra.mxu1 %v461_v5 }
 0x464   :  { %607 = vmatprep.subr.bf16.mxu0 %v467_v6  ;;  %877 = vmatprep.subr.bf16.mxu1 %v1004_v37 }
 0x467   :  { %608 = vmatpush1.bf16.msra.mxu0 %v466_v7  ;;  %878 = vmatpush3.bf16.msra.mxu1 %v468_v8 }
 0x468   :  { %609 = vmatprep.subr.bf16.mxu0 %v474_v9  ;;  %879 = vmatprep.subr.bf16.mxu1 %v1004_v37  ;;  %v493_v37 = vrot.slane %v476_v16, %v492_v18 }
 0x46b   :  { %610 = vmatpush1.bf16.msra.mxu0 %v473_v10  ;;  %880 = vmatpush3.bf16.msra.mxu1 %v475_v11 }
 0x46e   :  { %628 = vmatmul.mubr.bf16.vlgmr.msra.gmra.mrb[12].mxu0 %v419_v52  ;;  %882 = vmatmul.mubr.bf16.vlgmr.msra.gmra.mrb[12].mxu1 %v419_v52 }
 0x521   :  { %v547_v22 = vpop.f32.mrb[8].mxu0  ;;  %v588_v23 = vpop.f32.mrb[8].mxu1 }
 0x522   :  { %v548_v24 = vadd.f32 %v547_v22, %v481_v19  ;;  %v589_v25 = vadd.f32 %v588_v23, %v489_v20  ;;  %v549_v26 = vpop.f32.mrb[9].mxu0  ;;  %v590_v27 = vpop.f32.mrb[9].mxu1 }
 0x523   :  { %v550_v28 = vadd.f32 %v549_v26, %v485_v21  ;;  %v591_v29 = vadd.f32 %v590_v27, %v493_v37  ;;  %v551_v30 = vpop.f32.mrb[10].mxu0  ;;  %v592_v31 = vpop.f32.mrb[10].mxu1 }
 0x524   :  { %901 = vtanh.f32 %v548_v24  ;;  %v552_v32 = vpop.f32.mrb[11].mxu0  ;;  %v593_v33 = vpop.f32.mrb[11].mxu1 }
 0x525   :  { %903 = vtanh.f32 %v589_v25 }
 0x526   :  { %905 = vtanh.f32 %v550_v28 }
 0x527   :  { %907 = vtanh.f32 %v591_v29 }
 0x52e   :  { %v902_v34 = vpop.eup %901 }
 0x52f   :  { %v904_v35 = vpop.eup %903  ;;  %683 = vst [vmem:[%s1254_s11] sm:$0xff] %v902_v34 }
 0x530   :  { %v906_v36 = vpop.eup %905  ;;  %685 = vst [vmem:[%s1254_s11 + $0x10] sm:$0xff] %v904_v35 }
 0x531   :  { %v908_v38 = vpop.eup %907  ;;  %684 = vst [vmem:[%s1254_s11 + $0x8] sm:$0xff] %v906_v36 }
 0x532   :  { %686 = vst [vmem:[%s1254_s11 + $0x18] sm:$0xff] %v908_v38 }
 0x541   :  { %v629_v45 = vpop.f32.mrb[12].mxu0  ;;  %v670_v46 = vpop.f32.mrb[12].mxu1 }
 0x542   :  { %v630_v47 = vadd.f32 %v629_v45, %v497_v42  ;;  %v671_v48 = vadd.f32 %v670_v46, %v505_v43  ;;  %v631_v49 = vpop.f32.mrb[13].mxu0  ;;  %v883_v50 = vpop.f32.mrb[13].mxu1 }
 0x543   :  { %v632_v51 = vadd.f32 %v631_v49, %v501_v44  ;;  %v633_v52 = vpop.f32.mrb[14].mxu0  ;;  %v673_v53 = vpop.f32.mrb[14].mxu1 }
 0x544   :  { %909 = vtanh.f32 %v630_v47  ;;  %v634_v54 = vpop.f32.mrb[15].mxu0  ;;  %v884_v55 = vpop.f32.mrb[15].mxu1 }
 0x545   :  { %911 = vtanh.f32 %v671_v48 }
 0x546   :  { %913 = vtanh.f32 %v632_v51 }
 0x54e   :  { %v910_v56 = vpop.eup %909 }
 0x54f   :  { %v912_v57 = vpop.eup %911  ;;  %687 = vst [vmem:[%s1254_s11 + $0x20] sm:$0xff] %v910_v56 }
 0x550   :  { %v914_v58 = vpop.eup %913  ;;  %689 = vst [vmem:[%s1254_s11 + $0x30] sm:$0xff] %v912_v57 }
 0x551   :  { %688 = vst [vmem:[%s1254_s11 + $0x28] sm:$0xff] %v914_v58 }
 0x552   :  { %694 = vsyncmov [#allocation7] }
 0x555   :  { %s695_s20 = vpop.sfrf %694 }
 0x556   :  { %p742_p10 = scmp.ne.s32.totalorder %s695_s20, 0 }
 0x558   :  { %699 = shalt.err (%p742_p10)  }
 0x559   :  { %701 = vsyncmov [#allocation7 + $0x1] }
 0x55c   :  { %s702_s21 = vpop.sfrf %701 }
 0x55d   :  { %p743_p11 = scmp.ne.s32.totalorder %s702_s21, 0 }
 0x55f   :  { %706 = shalt.err (%p743_p11)  }
 0x560   :  { %708 = vsyncmov [#allocation7 + $0x2] }
 0x563   :  { %s709_s22 = vpop.sfrf %708 }
 0x564   :  { %p744_p12 = scmp.ne.s32.totalorder %s709_s22, 0 }
 0x566   :  { %713 = shalt.err (%p744_p12)  }
 0x567   :  { %715 = vsyncmov [#allocation7 + $0x3] }
 0x56a   :  { %s716_s23 = vpop.sfrf %715 }
 0x56b   :  { %p745_p13 = scmp.ne.s32.totalorder %s716_s23, 0 }
 0x56d   :  { %720 = shalt.err (%p745_p13)  }
 0x56e   :  { %722 = vsyncmov [#allocation7 + $0x4] }
 0x571   :  { %s723_s2 = vpop.sfrf %722 }
 0x572   :  { %p746_p0 = scmp.ne.s32.totalorder %s723_s2, 0 }
 0x574   :  { %727 = shalt.err (%p746_p0)  }

</bundles_post_ra>
